<compile_context>
chip_gen: v7x
topology: tpu7x:2x2x1
jax: 0.10.0
libtpu: 0.0.40
codegen_flags: <defaults>
</compile_context>

<pallas_src>
import jax
import jax.numpy as jnp
from jax import lax
from jax.experimental import pallas as pl
from jax.experimental.pallas import tpu as pltpu


def target_network_kernel(x_ref, w_ref, thr_ref, ow_ref, ob_ref, out_ref):
    # x_ref: (TB, D) f32 contiguous row block of x; cast in-kernel (exact: entries are 0/1).
    x_bf = x_ref[...].astype(jnp.bfloat16)
    # (H, D) bf16 contracted with (TB, D) bf16 over axis 1 of both -> (H, TB) f32.
    # Batch lives on the lane axis end-to-end (lane-dense output row).
    pre_t = lax.dot_general(
        w_ref[...], x_bf,
        dimension_numbers=(((1,), (1,)), ((), ())),
        preferred_element_type=jnp.float32,
    )
    # Fused LTU + output-weight contraction on the VPU/XLU (no `hidden` materialization,
    # no N=1 MXU matmul):  out[b] = sum_h (pre_t[h,b] > thr[h]) * ow[h]
    contrib = jnp.where(pre_t > thr_ref[...], ow_ref[...], jnp.float32(0.0))  # (H, TB)
    out_ref[...] = jnp.sum(contrib, axis=0, keepdims=True) + ob_ref[0]        # (1, TB)


def _round_up(a, m):
    return ((a + m - 1) // m) * m


def target_network_forward(x, weights, thresholds, output_weights, output_bias,
                           *, batch_tile=8192):
    """x: (B, D) f32; weights: (H, D); thresholds: (H,); output_weights: (1, H); output_bias: (1,)."""
    B, D = x.shape
    H = weights.shape[0]

    # Batch tile: at least one full 128-lane tile (keeps the output store unmasked and
    # vregs dense), at most `batch_tile` (multiple of 128).
    TB = min(_round_up(batch_tile, 128), _round_up(B, 128))
    # Keep >= 2 grid steps when the batch allows, so the "parallel" batch axis can shard
    # across both TensorCores on v7x (harmless single-TC loop on v5e/v6e).
    if B > 256 and pl.cdiv(B, TB) < 2:
        TB = _round_up(pl.cdiv(B, 2), 128)
    Bp = _round_up(B, TB)

    # x stays in its natural (B, D) f32 row-major layout: no transpose / cast HBM pass.
    # Only pad (one extra pass) when B is not a TB multiple; padded rows produce garbage
    # that is discarded by the final slice.
    if Bp != B:
        x = jnp.pad(x, ((0, Bp - B), (0, 0)))

    w = weights.astype(jnp.bfloat16)                    # exact: weights are +/-1 (tiny, one-time)
    thr = thresholds.reshape(H, 1).astype(jnp.float32)
    ow = output_weights.reshape(H, 1).astype(jnp.float32)
    ob = output_bias.reshape(1).astype(jnp.float32)

    out_t = pl.pallas_call(
        target_network_kernel,
        out_shape=jax.ShapeDtypeStruct((1, Bp), jnp.float32),
        grid=(Bp // TB,),
        in_specs=[
            pl.BlockSpec((TB, D), lambda i: (i, 0)),    # contiguous x row block (batch tiled)
            pl.BlockSpec((H, D), lambda i: (0, 0)),     # weights, stored layout, resident
            pl.BlockSpec((H, 1), lambda i: (0, 0)),     # thresholds (column)
            pl.BlockSpec((H, 1), lambda i: (0, 0)),     # output weights (column)
            pl.BlockSpec(memory_space=pltpu.MemorySpace.SMEM),  # output bias scalar
        ],
        out_specs=pl.BlockSpec((1, TB), lambda i: (0, i)),      # lane-dense output row
        compiler_params=pltpu.CompilerParams(
            dimension_semantics=("parallel",),          # batch tiles independent
            vmem_limit_bytes=32 * 1024 * 1024,          # headroom for large TB on v5e defaults
        ),
    )(x, w, thr, ow, ob)

    return out_t[0, :B].reshape(B, 1)


def make_target_network_params(key, input_size, hidden_size, beta):
    """Deterministic synthetic init matching TargetNetwork.__init__ semantics."""
    k1, k2, k3 = jax.random.split(key, 3)
    # torch.randint(0, 2, ...) * 2 - 1  ->  values in {-1, +1}
    weights = (jax.random.randint(k1, (hidden_size, input_size), 0, 2).astype(jnp.float32)
               * 2.0 - 1.0)
    output_weights = (jax.random.randint(k2, (1, hidden_size), 0, 2).astype(jnp.float32)
                      * 2.0 - 1.0)
    output_bias = (jax.random.randint(k3, (1,), 0, 2).astype(jnp.float32) * 2.0 - 1.0)
    # S = sum(weights[:, :input_size-1] < 0, dim=1) - 0.5 * weights[:, -1]
    S = jnp.sum((weights[:, : input_size - 1] < 0).astype(jnp.float32), axis=1) \
        - 0.5 * weights[:, -1]
    thresholds = input_size * beta - S
    return weights, output_weights, output_bias, thresholds


def reference_forward(x, weights, thresholds, output_weights, output_bias):
    pre = x @ weights.T
    hidden = (pre > thresholds[None, :]).astype(jnp.float32)
    return hidden @ output_weights.T + output_bias


if __name__ == "__main__":
    input_size = 16
    hidden_size = 32
    beta = 0.7

    key = jax.random.PRNGKey(0)
    k_params, k_x1, k_x2 = jax.random.split(key, 3)
    weights, output_weights, output_bias, thresholds = make_target_network_params(
        k_params, input_size, hidden_size, beta)

    # Small batch: padded up to one full 128-lane tile, single grid step.
    batch = 8
    x = jax.random.randint(k_x1, (batch, input_size), 0, 2).astype(jnp.float32)
    out = target_network_forward(x, weights, thresholds, output_weights, output_bias)
    out = jax.block_until_ready(out)
    ref = reference_forward(x, weights, thresholds, output_weights, output_bias)
    assert out.shape == (batch, 1), out.shape
    assert jnp.allclose(out, ref, atol=1e-5), (out, ref)

    # Larger, non-multiple batch exercising the tiled / padded / multi-step parallel grid.
    batch2 = 600
    x2 = jax.random.randint(k_x2, (batch2, input_size), 0, 2).astype(jnp.float32)
    out2 = target_network_forward(x2, weights, thresholds, output_weights, output_bias,
                                  batch_tile=256)
    out2 = jax.block_until_ready(out2)
    ref2 = reference_forward(x2, weights, thresholds, output_weights, output_bias)
    assert out2.shape == (batch2, 1), out2.shape
    assert jnp.allclose(out2, ref2, atol=1e-5), (out2, ref2)

    print("KERNEL_OK")
</pallas_src>

<mosaic_0001>
module attributes {stable_mosaic.version = 11 : i64} {
  func.func @target_network_kernel(%arg0: i32, %arg1: memref<128x16xf32, #tpu.memory_space<vmem>>, %arg2: memref<32x16xbf16, #tpu.memory_space<vmem>>, %arg3: memref<32x1xf32, #tpu.memory_space<vmem>>, %arg4: memref<32x1xf32, #tpu.memory_space<vmem>>, %arg5: memref<1xf32, #tpu.memory_space<smem>>, %arg6: memref<1x128xf32, #tpu.memory_space<vmem>>) attributes {dimension_semantics = [#tpu.dimension_semantics<parallel>], iteration_bounds = array<i64: 1>, scalar_prefetch = 0 : i64, scratch_operands = 0 : i64, tpu.core_type = #tpu.core_type<tc>, window_params = [{transform_indices = @transform_0, window_bounds = array<i64: 128, 16>}, {pipeline_mode = #tpu.pipeline_mode<synchronous>, transform_indices = @transform_1, window_bounds = array<i64: 32, 16>}, {pipeline_mode = #tpu.pipeline_mode<synchronous>, transform_indices = @transform_2, window_bounds = array<i64: 32, 1>}, {pipeline_mode = #tpu.pipeline_mode<synchronous>, transform_indices = @transform_3, window_bounds = array<i64: 32, 1>}, {transform_indices = @transform_4, window_bounds = array<i64: 1>}, {transform_indices = @transform_5, window_bounds = array<i64: 1, 128>}]} {
    %c0 = arith.constant 0 : index
    %c0_0 = arith.constant 0 : index
    %0 = vector.load %arg1[%c0, %c0_0] : memref<128x16xf32, #tpu.memory_space<vmem>>, vector<128x16xf32>
    %1 = arith.truncf %0 : vector<128x16xf32> to vector<128x16xbf16>
    %c0_1 = arith.constant 0 : index
    %c0_2 = arith.constant 0 : index
    %2 = vector.load %arg2[%c0_1, %c0_2] : memref<32x16xbf16, #tpu.memory_space<vmem>>, vector<32x16xbf16>
    %cst = arith.constant dense<0.000000e+00> : vector<32x128xf32>
    %3 = tpu.matmul %2, %1, %cst {dimension_numbers = #tpu.dot_dimension_numbers<[1], [1], [0], [0], [0, 0, 1, 0], [], []>} : vector<32x16xbf16>, vector<128x16xbf16>, vector<32x128xf32> -> vector<32x128xf32>
    %c0_3 = arith.constant 0 : index
    %c0_4 = arith.constant 0 : index
    %4 = vector.load %arg3[%c0_3, %c0_4] : memref<32x1xf32, #tpu.memory_space<vmem>>, vector<32x1xf32>
    %5 = vector.broadcast %4 : vector<32x1xf32> to vector<32x128xf32>
    %6 = arith.cmpf ogt, %3, %5 : vector<32x128xf32>
    %c0_5 = arith.constant 0 : index
    %c0_6 = arith.constant 0 : index
    %7 = vector.load %arg4[%c0_5, %c0_6] : memref<32x1xf32, #tpu.memory_space<vmem>>, vector<32x1xf32>
    %cst_7 = arith.constant 0.000000e+00 : f32
    %8 = vector.shape_cast %7 : vector<32x1xf32> to vector<32x1xf32>
    %9 = vector.broadcast %8 : vector<32x1xf32> to vector<32x128xf32>
    %10 = vector.broadcast %cst_7 : f32 to vector<32x128xf32>
    %11 = arith.select %6, %9, %10 : vector<32x128xi1>, vector<32x128xf32>
    %cst_8 = arith.constant dense<0.000000e+00> : vector<128xf32>
    %12 = vector.multi_reduction <add>, %11, %cst_8 [0] : vector<32x128xf32> to vector<128xf32>
    %13 = vector.shape_cast %12 : vector<128xf32> to vector<1x128xf32>
    %c0_9 = arith.constant 0 : index
    %14 = memref.load %arg5[%c0_9] : memref<1xf32, #tpu.memory_space<smem>>
    %15 = vector.broadcast %14 : f32 to vector<1x128xf32>
    %16 = arith.addf %13, %15 : vector<1x128xf32>
    %c0_10 = arith.constant 0 : index
    %c0_11 = arith.constant 0 : index
    %17 = vector.load %arg6[%c0_10, %c0_11] : memref<1x128xf32, #tpu.memory_space<vmem>>, vector<1x128xf32>
    tpu.vector_store %arg6[%c0_10, %c0_11], %16 {strides = array<i32>} : memref<1x128xf32, #tpu.memory_space<vmem>>, vector<1x128xf32>,
    return
  }
  func.func @transform_0(%arg0: i32) -> (i32, i32) {
    %c0_i32 = arith.constant 0 : i32
    %c0_i32_0 = arith.constant 0 : i32
    return %arg0, %c0_i32 : i32, i32
  }
  func.func @transform_1(%arg0: i32) -> (i32, i32) {
    %c0_i32 = arith.constant 0 : i32
    %c0_i32_0 = arith.constant 0 : i32
    %c0_i32_1 = arith.constant 0 : i32
    return %c0_i32, %c0_i32_0 : i32, i32
  }
  func.func @transform_2(%arg0: i32) -> (i32, i32) {
    %c0_i32 = arith.constant 0 : i32
    %c0_i32_0 = arith.constant 0 : i32
    %c0_i32_1 = arith.constant 0 : i32
    return %c0_i32, %c0_i32_0 : i32, i32
  }
  func.func @transform_3(%arg0: i32) -> (i32, i32) {
    %c0_i32 = arith.constant 0 : i32
    %c0_i32_0 = arith.constant 0 : i32
    %c0_i32_1 = arith.constant 0 : i32
    return %c0_i32, %c0_i32_0 : i32, i32
  }
  func.func @transform_4(%arg0: i32) -> i32 {
    %c0_i32 = arith.constant 0 : i32
    %c0_i32_0 = arith.constant 0 : i32
    return %c0_i32 : i32
  }
  func.func @transform_5(%arg0: i32) -> (i32, i32) {
    %c0_i32 = arith.constant 0 : i32
    %c0_i32_0 = arith.constant 0 : i32
    return %c0_i32, %arg0 : i32, i32
  }
}

</mosaic_0001>

<bundles_post_ra>
// kernel: tpu_custom_call.1
= control target key start
LH: loop header
LB: loop body
LE: loop exit
PB: predicated region body
PF: predicated region fallthrough
CT: control target
= control target key end

     0   :  { %vm61_vm0 = vcmask 130048   ;;  %v296_v5 = vmov 0   ;;  %s439_s0 = inlined_call_operand.vmem [shape: f32[128,16], index: 0, kind: input, shape index: {}]   ;;  %s440_s1 = inlined_call_operand.vmem [shape: bf16[32,16], index: 1, kind: input, shape index: {}]   ;;  %s441_s2 = inlined_call_operand.vmem [shape: f32[32,1], index: 2, kind: input, shape index: {}]   ;;  %s442_s3 = inlined_call_operand.vmem [shape: f32[32,1], index: 3, kind: input, shape index: {}]   ;;  %s443_s4 = inlined_call_operand.<no memory space> [shape: f32[1], index: 4, kind: input, shape index: {}]   ;;  %s444_s5 = inlined_call_operand.hbm [shape: f32[1,128], index: 5, kind: output, shape index: {}]  }
   0x1   :  { %v23_v0 = vld [vmem:[%s439_s0] sm:$0xff]  ;;  %v24_v1 = vld [vmem:[%s439_s0 + $0x8] sm:$0xff]  ;;  %v25_v2 = vld [vmem:[%s439_s0 + $0x10] sm:$0xff]  ;;  %268 = vset.pattern.permute.xlu0 %v296_v5  ;;  %269 = vset.pattern.permute.xlu1 %v296_v5 }
   0x2   :  { %v39_v3 = vpack.c.bf16 %v24_v1, %v23_v0  ;;  %v26_v4 = vld [vmem:[%s439_s0 + $0x18] sm:$0xff]  ;;  %v27_v8 = vld [vmem:[%s439_s0 + $0x20] sm:$0xff]  ;;  %v28_v9 = vld [vmem:[%s439_s0 + $0x28] sm:$0xff] }
   0x3   :  { %v40_v6 = vpack.c.bf16 %v26_v4, %v25_v2  ;;  %v270_v10 = vld [vmem:[%s440_s1] sm:$0xff]   ;;  %v41_v14 = vpack.c.bf16 %v28_v9, %v27_v8  ;;  %v142_v15 = vld [vmem:[%s441_s2 + $0x8] sm:$0xff] }
   0x4   :  { %258 = vmatprep.subr.msk.bf16.mxu0 %vm61_vm0, %v39_v3  ;;  %v69_v7 = vsel %vm61_vm0, %v39_v3, 0  ;;  %v141_v11 = vld [vmem:[%s441_s2] sm:$0xff]  ;;  %254 = vmatprep.mubr.msk.bf16.mxu0 %vm61_vm0, %v270_v10  ;;  %v170_v16 = vld [vmem:[%s442_s3 + $0x8] sm:$0xff] }
   0x5   :  { %239 = vmatpush3.bf16.xpose.msra.mxu0 %v69_v7  ;;  %v169_v12 = vld [vmem:[%s442_s3] sm:$0xff]  ;;  %147 = vperm.xlu0 %268, %v141_v11   ;;  %v72_v13 = vsel %vm61_vm0, %v40_v6, 0 }
   0x6   :  { %259 = vmatprep.subr.msk.bf16.mxu0 %vm61_vm0, %v40_v6  ;;  %175 = vperm.xlu1 %269, %v169_v12  }
   0x7   :  { %11 = vsyncpa [#allocation4], 0  ;;  %v143_v17 = vld [vmem:[%s441_s2 + $0x10] sm:$0xff]  ;;  %v30_v19 = vld [vmem:[%s439_s0 + $0x38] sm:$0xff]  ;;  %v75_v21 = vsel %vm61_vm0, %v41_v14, 0  ;;  %v207_v3 = vstv %s443_s4  ;;  %s297_s18 = smov [#allocation3]  }
   0x8   :  { %v29_v18 = vld [vmem:[%s439_s0 + $0x30] sm:$0xff]  ;;  %v144_v23 = vld [vmem:[%s441_s2 + $0x18] sm:$0xff]  ;;  %v31_v25 = vld [vmem:[%s439_s0 + $0x40] sm:$0xff]  ;;  %s216_s19 = sshll.u32 %s297_s18, 4  ;;  %s217_s19 = int_to_ptr.vmem [resolvable:$true] %s216_s19 }
   0x9   :  { %152 = vperm.xlu0 %268, %v142_v15   ;;  %v171_v20 = vld [vmem:[%s442_s3 + $0x10] sm:$0xff]  ;;  %v42_v22 = vpack.c.bf16 %v30_v19, %v29_v18  ;;  %v172_v24 = vld [vmem:[%s442_s3 + $0x18] sm:$0xff]  ;;  %v32_v26 = vld [vmem:[%s439_s0 + $0x48] sm:$0xff]  ;;  %s272_s20 = scalar_lea.vmem %s217_s19, 16  ;;  %s276_s21 = scalar_lea.vmem %s217_s19, 32 }
   0xa   :  { %180 = vperm.xlu1 %269, %v170_v16   ;;  %v43_v28 = vpack.c.bf16 %v32_v26, %v31_v25  ;;  %v33_v29 = vld [vmem:[%s439_s0 + $0x50] sm:$0xff]  ;;  %v34_v30 = vld [vmem:[%s439_s0 + $0x58] sm:$0xff]  ;;  %v35_v33 = vld [vmem:[%s439_s0 + $0x60] sm:$0xff]  ;;  %p273_p0 = scmp.ne.s32.totalorder %s217_s19, %s272_s20  ;;  %p277_p1 = scmp.lt.s32.totalorder %s217_s19, %s217_s19 }
   0xb   :  { %v78_v27 = vsel %vm61_vm0, %v42_v22, 0  ;;  %v44_v32 = vpack.c.bf16 %v34_v30, %v33_v29  ;;  %v36_v34 = vld [vmem:[%s439_s0 + $0x68] sm:$0xff]  ;;  %v37_v37 = vld [vmem:[%s439_s0 + $0x70] sm:$0xff]  ;;  %v38_v38 = vld [vmem:[%s439_s0 + $0x78] sm:$0xff]  ;;  %p278_p2 = scmp.lt.s32.totalorder %s276_s21, %s272_s20 }
   0xc   :  { %v81_v31 = vsel %vm61_vm0, %v43_v28, 0  ;;  %v45_v36 = vpack.c.bf16 %v36_v34, %v35_v33  ;;  %v46_v40 = vpack.c.bf16 %v38_v38, %v37_v37  ;;  %v271_v42 = vld [vmem:[%s440_s1 + $0x8] sm:$0xff]  }
   0xd   :  { %241 = vmatpush3.bf16.xpose.msra.mxu0 %v72_v13  ;;  %157 = vperm.xlu0 %268, %v143_v17   ;;  %v84_v35 = vsel %vm61_vm0, %v44_v32, 0  ;;  %p279_p3 = por %p278_p2, %p277_p1 }
   0xe   :  { %260 = vmatprep.subr.msk.bf16.mxu0 %vm61_vm0, %v41_v14  ;;  %185 = vperm.xlu1 %269, %v171_v20   ;;  %v87_v39 = vsel %vm61_vm0, %v45_v36, 0  ;;  %v90_v41 = vsel %vm61_vm0, %v46_v40, 0 }
   0xf   :  { %p280_p4 = pnand %p279_p3, %p273_p0 }
  0x11   :  { %162 = vperm.xlu0 %268, %v144_v23  }
  0x12   :  { %190 = vperm.xlu1 %269, %v172_v24  }
  0x15   :  { %243 = vmatpush3.bf16.xpose.msra.mxu0 %v75_v21 }
  0x16   :  { %261 = vmatprep.subr.msk.bf16.mxu0 %vm61_vm0, %v42_v22 }
  0x1d   :  { %245 = vmatpush3.bf16.xpose.msra.mxu0 %v78_v27 }
  0x1e   :  { %262 = vmatprep.subr.msk.bf16.mxu0 %vm61_vm0, %v43_v28 }
  0x25   :  { %247 = vmatpush3.bf16.xpose.msra.mxu0 %v81_v31 }
  0x26   :  { %263 = vmatprep.subr.msk.bf16.mxu0 %vm61_vm0, %v44_v32 }
  0x2d   :  { %249 = vmatpush3.bf16.xpose.msra.mxu0 %v84_v35 }
  0x2e   :  { %264 = vmatprep.subr.msk.bf16.mxu0 %vm61_vm0, %v45_v36 }
  0x35   :  { %251 = vmatpush3.bf16.xpose.msra.mxu0 %v87_v39 }
  0x36   :  { %265 = vmatprep.subr.msk.bf16.mxu0 %vm61_vm0, %v46_v40 }
  0x3d   :  { %253 = vmatpush3.bf16.xpose.msra.mxu0 %v90_v41 }
  0x44   :  { %255 = vmatmul.mubr.msk.bf16.vlgmr.msra.gmra.mrb[0].mxu0 %vm61_vm0, %v271_v42 }
  0x84   :  { %v148_v43 = vpop.permute.xlu0 %147 }
  0x85   :  { %v176_v44 = vpop.permute.xlu1 %175 }
  0x88   :  { %v153_v45 = vpop.permute.xlu0 %152 }
  0x89   :  { %v181_v46 = vpop.permute.xlu1 %180 }
  0x8c   :  { %v158_v47 = vpop.permute.xlu0 %157 }
  0x8d   :  { %v186_v50 = vpop.permute.xlu1 %185 }
  0x90   :  { %v163_v53 = vpop.permute.xlu0 %162 }
  0x91   :  { %v191_v58 = vpop.permute.xlu1 %190 }
 0x117   :  { %v256_v48 = vpop.f32.mrb[0].mxu0 }
 0x118   :  { %v126_v49 = vpop.f32.mrb[1].mxu0  ;;  %vm167_vm2 = vcmp.gt.f32.partialorder %v256_v48, %v158_v47 }
 0x119   :  { %vm165_vm1 = vcmp.gt.f32.partialorder %v126_v49, %v148_v43  ;;  %v257_v51 = vpop.f32.mrb[2].mxu0  ;;  %v195_v57 = vsel %vm167_vm2, %v186_v50, 0.0 }
 0x11a   :  { %v129_v52 = vpop.f32.mrb[3].mxu0  ;;  %v193_v54 = vsel %vm165_vm1, %v176_v44, 0.0  ;;  %vm168_vm4 = vcmp.gt.f32.partialorder %v257_v51, %v163_v53 }
 0x11b   :  { %vm166_vm3 = vcmp.gt.f32.partialorder %v129_v52, %v153_v45  ;;  %v196_v60 = vsel %vm168_vm4, %v191_v58, 0.0 }
 0x11c   :  { %v194_v55 = vsel %vm166_vm3, %v181_v46, 0.0 }
 0x11d   :  { %v197_v56 = vadd.f32 %v194_v55, %v193_v54 }
 0x11f   :  { %v198_v59 = vadd.f32 %v197_v56, %v195_v57 }
 0x121   :  { %v199_v61 = vadd.f32 %v198_v59, %v196_v60 }
 0x123   :  { %v200_v62 = vrot.slane %v199_v61, 4 }
 0x125   :  { %v201_v63 = vadd.f32 %v200_v62, %v199_v61 }
 0x127   :  { %v202_v0 = vrot.slane %v201_v63, 2 }
 0x129   :  { %v203_v1 = vadd.f32 %v202_v0, %v201_v63 }
 0x12b   :  { %v204_v2 = vrot.slane %v203_v1, 1 }
 0x12d   :  { %v205_v4 = vadd.f32 %v204_v2, %v203_v1 }
 0x12f   :  { %v208_v5 = vadd.f32 %v207_v3, %v205_v4 }
 0x131   :  { %209 = vst [vmem:[#allocation3] sm:$0x1] %v208_v5 }
 0x132   :  { %283 = shalt.err (!%p280_p4)
}
 0x133   :  { %s284_s24 = scalar_lea.hbm %s444_s5, 16 }
 0x134   :  { %p285_p5 = scmp.ne.s32.totalorder %s444_s5, %s284_s24  ;;  %p288_p6 = scmp.lt.u32.totalorder %s284_s24, %s444_s5 }
 0x136   :  { %p290_p7 = pnand %p288_p6, %p285_p5 }
 0x138   :  { %293 = shalt.err (!%p290_p7)
}
 0x139   :  { %219 = dma.vmem_to_hbm [thread:$0]  %s217_s19, 16, %s444_s5, [#allocation4]  }
 0x13a   :  { %294 = dma.done.wait [#allocation4], 16  }
 0x13b   :  { %295 = vsyncadd [#allocation4], 4294967280 }
 0x13c   :  { %223 = vsyncpa [#allocation4], 1 }

</bundles_post_ra>
